<compile_context>
chip_gen: v7x
topology: tpu7x:2x2x1
jax: 0.10.0
libtpu: 0.0.40
codegen_flags: <defaults>
</compile_context>

<pallas_src>
import jax
import jax.numpy as jnp
from jax.experimental import pallas as pl
from jax.experimental.pallas import tpu as pltpu


_TARGET_BLOCK_ELEMS = 1024 * 512   # ~2 MiB per f32 buffer per tile
_MIN_PALLAS_SIZE = 4096            # below this, fused XLA elementwise wins


def _exp_cutoff_math(x, c):
    inside = x < c
    d = jnp.where(inside, x, jnp.float32(0.0))   # mirrors torch.where(dist < cutoff, dist, 0)
    val = jnp.exp(-(d * d) / ((c - d) * (c + d)))
    return jnp.where(inside, val, jnp.float32(0.0))


def _exp_cutoff_kernel(cutoff_ref, x_ref, o_ref):
    c = cutoff_ref[0]
    x = x_ref[...].astype(jnp.float32)
    o_ref[...] = _exp_cutoff_math(x, c).astype(o_ref.dtype)


def _pick_lanes(n: int):
    """Largest lane width (multiple of 128) dividing n, to avoid pad/slice copies."""
    for lanes in (512, 256, 128):
        if n % lanes == 0:
            return lanes, False
    return 128, True   # must pad up to the next multiple of 128


def exponential_cutoff(dist: jax.Array, cutoff: float) -> jax.Array:
    """Pallas implementation of ExponentialCutoff.forward for any-shaped `dist`."""
    orig_shape = dist.shape
    orig_dtype = dist.dtype
    n = dist.size

    cutoff_arr = jnp.asarray(cutoff, dtype=jnp.float32).reshape(1)

    # Tiny inputs: plain fused XLA elementwise beats any pallas_call launch cost.
    if n < _MIN_PALLAS_SIZE:
        out = _exp_cutoff_math(dist.astype(jnp.float32), cutoff_arr[0])
        return out.astype(orig_dtype)

    lanes, needs_pad = _pick_lanes(n)

    flat = dist.reshape(-1)
    if needs_pad:
        # Last resort: pad to the minimal lane multiple (extra HBM copy, unavoidable).
        flat = jnp.pad(flat, (0, lanes - n % lanes))
    rows = flat.shape[0] // lanes
    slab = flat.reshape(rows, lanes)

    # ~512K elements per tile; keep row blocks sublane-aligned (multiple of 8).
    block_rows = _TARGET_BLOCK_ELEMS // lanes
    if rows <= block_rows:
        block_rows = rows           # full-extent block (allowed even if not %8)
    grid = (pl.cdiv(rows, block_rows),)

    out = pl.pallas_call(
        _exp_cutoff_kernel,
        out_shape=jax.ShapeDtypeStruct((rows, lanes), orig_dtype),
        grid_spec=pltpu.PrefetchScalarGridSpec(
            num_scalar_prefetch=0,
            grid=grid,
            in_specs=[
                pl.BlockSpec(memory_space=pltpu.MemorySpace.SMEM),     # cutoff scalar
                pl.BlockSpec((block_rows, lanes), lambda i: (i, 0)),   # dist slab
            ],
            out_specs=pl.BlockSpec((block_rows, lanes), lambda i: (i, 0)),
        ),
        compiler_params=pltpu.CompilerParams(
            dimension_semantics=("parallel",),
            vmem_limit_bytes=32 * 1024 * 1024,
        ),
    )(cutoff_arr, slab)

    if needs_pad:
        out = out.reshape(-1)[:n]
    return out.reshape(orig_shape)


def exponential_cutoff_ref(dist: jax.Array, cutoff: float) -> jax.Array:
    inside = dist < cutoff
    d = jnp.where(inside, dist, 0.0)
    return jnp.where(inside, jnp.exp(-(d * d) / ((cutoff - d) * (cutoff + d))), 0.0)


if __name__ == "__main__":
    key = jax.random.PRNGKey(0)
    cutoff = 5.0
    k1, k2, k3, k4 = jax.random.split(key, 4)

    # 1) Pallas path, lane-aligned: per-edge distances (num_edges, 1).
    dist_a = jax.random.uniform(k1, (8192, 1), jnp.float32, minval=0.0, maxval=1.5 * cutoff)
    out_a = jax.block_until_ready(exponential_cutoff(dist_a, cutoff))
    assert out_a.shape == dist_a.shape and out_a.dtype == dist_a.dtype
    assert jnp.allclose(out_a, exponential_cutoff_ref(dist_a, cutoff), atol=1e-5, rtol=1e-5)

    # 2) Pallas path, size divisible by 128 but not 512 (no-pad adaptive-lane path).
    dist_b = jax.random.uniform(k2, (4480,), jnp.float32, minval=0.0, maxval=1.5 * cutoff)
    out_b = jax.block_until_ready(exponential_cutoff(dist_b, cutoff))
    assert out_b.shape == dist_b.shape
    assert jnp.allclose(out_b, exponential_cutoff_ref(dist_b, cutoff), atol=1e-5, rtol=1e-5)

    # 3) Pallas path, fully unaligned size (exercises pad + slice-back fallback).
    dist_c = jax.random.uniform(k3, (4099,), jnp.float32, minval=0.0, maxval=1.5 * cutoff)
    out_c = jax.block_until_ready(exponential_cutoff(dist_c, cutoff))
    assert out_c.shape == dist_c.shape
    assert jnp.allclose(out_c, exponential_cutoff_ref(dist_c, cutoff), atol=1e-5, rtol=1e-5)

    # 4) Tiny input -> fused-jnp fallback path.
    dist_d = jax.random.uniform(k4, (17, 3), jnp.float32, minval=0.0, maxval=1.5 * cutoff)
    out_d = jax.block_until_ready(exponential_cutoff(dist_d, cutoff))
    assert out_d.shape == dist_d.shape
    assert jnp.allclose(out_d, exponential_cutoff_ref(dist_d, cutoff), atol=1e-5, rtol=1e-5)

    print("KERNEL_OK")
</pallas_src>

<mosaic_0001>
module attributes {stable_mosaic.version = 11 : i64} {
  func.func @_exp_cutoff_kernel(%arg0: i32, %arg1: memref<1xf32, #tpu.memory_space<smem>>, %arg2: memref<16x512xf32, #tpu.memory_space<vmem>>, %arg3: memref<16x512xf32, #tpu.memory_space<vmem>>) attributes {dimension_semantics = [#tpu.dimension_semantics<parallel>], iteration_bounds = array<i64: 1>, scalar_prefetch = 0 : i64, scratch_operands = 0 : i64, tpu.core_type = #tpu.core_type<tc>, window_params = [{transform_indices = @transform_0, window_bounds = array<i64: 1>}, {transform_indices = @transform_1, window_bounds = array<i64: 16, 512>}, {transform_indices = @transform_2, window_bounds = array<i64: 16, 512>}]} {
    %c0 = arith.constant 0 : index
    %0 = memref.load %arg1[%c0] : memref<1xf32, #tpu.memory_space<smem>>
    %c0_0 = arith.constant 0 : index
    %c0_1 = arith.constant 0 : index
    %1 = vector.load %arg2[%c0_0, %c0_1] : memref<16x512xf32, #tpu.memory_space<vmem>>, vector<16x512xf32>
    %2 = vector.broadcast %0 : f32 to vector<16x512xf32>
    %3 = arith.cmpf olt, %1, %2 : vector<16x512xf32>
    %cst = arith.constant 0.000000e+00 : f32
    %4 = vector.broadcast %cst : f32 to vector<16x512xf32>
    %5 = arith.select %3, %1, %4 : vector<16x512xi1>, vector<16x512xf32>
    %6 = arith.mulf %5, %5 : vector<16x512xf32>
    %cst_2 = arith.constant 0.000000e+00 : f32
    %7 = vector.broadcast %cst_2 : f32 to vector<16x512xf32>
    %8 = arith.subf %7, %6 : vector<16x512xf32>
    %9 = vector.broadcast %0 : f32 to vector<16x512xf32>
    %10 = arith.subf %9, %5 : vector<16x512xf32>
    %11 = vector.broadcast %0 : f32 to vector<16x512xf32>
    %12 = arith.addf %11, %5 : vector<16x512xf32>
    %13 = arith.mulf %10, %12 : vector<16x512xf32>
    %14 = arith.divf %8, %13 : vector<16x512xf32>
    %15 = math.exp %14 : vector<16x512xf32>
    %cst_3 = arith.constant 0.000000e+00 : f32
    %16 = vector.broadcast %cst_3 : f32 to vector<16x512xf32>
    %17 = arith.select %3, %15, %16 : vector<16x512xi1>, vector<16x512xf32>
    %c0_4 = arith.constant 0 : index
    %c0_5 = arith.constant 0 : index
    %18 = vector.load %arg3[%c0_4, %c0_5] : memref<16x512xf32, #tpu.memory_space<vmem>>, vector<16x512xf32>
    tpu.vector_store %arg3[%c0_4, %c0_5], %17 {strides = array<i32>} : memref<16x512xf32, #tpu.memory_space<vmem>>, vector<16x512xf32>,
    return
  }
  func.func @transform_0(%arg0: i32) -> i32 {
    %c0_i32 = arith.constant 0 : i32
    %c0_i32_0 = arith.constant 0 : i32
    return %c0_i32 : i32
  }
  func.func @transform_1(%arg0: i32) -> (i32, i32) {
    %c0_i32 = arith.constant 0 : i32
    %c0_i32_0 = arith.constant 0 : i32
    return %arg0, %c0_i32 : i32, i32
  }
  func.func @transform_2(%arg0: i32) -> (i32, i32) {
    %c0_i32 = arith.constant 0 : i32
    %c0_i32_0 = arith.constant 0 : i32
    return %arg0, %c0_i32 : i32, i32
  }
}

</mosaic_0001>

<bundles_post_ra>
// kernel: tpu_custom_call.1
= control target key start
LH: loop header
LB: loop body
LE: loop exit
PB: predicated region body
PF: predicated region fallthrough
CT: control target
= control target key end

     0   :  { %8 = vsyncpa [#allocation4], 0  ;;  %s400_s0 = inlined_call_operand.<no memory space> [shape: f32[1], index: 0, kind: input, shape index: {}]   ;;  %s401_s1 = inlined_call_operand.hbm [shape: f32[16,512], index: 1, kind: input, shape index: {}]   ;;  %s402_s2 = inlined_call_operand.hbm [shape: f32[16,512], index: 2, kind: output, shape index: {}]  }
   0x1   :  { %9 = vsyncpa [#allocation5], 0  ;;  %s242_s9 = smov [#allocation3]   ;;  %s194_s13 = scalar_lea.hbm %s401_s1, 1024 }
   0x2   :  { %s17_s10 = sshll.u32 %s242_s9, 4  ;;  %p195_p0 = scmp.ne.s32.totalorder %s401_s1, %s194_s13  ;;  %s18_s10 = int_to_ptr.vmem [resolvable:$true] %s17_s10 }
   0x3   :  { %p198_p1 = scmp.lt.u32.totalorder %s194_s13, %s401_s1 }
   0x5   :  { %p200_p2 = pnand %p198_p1, %p195_p0 }
   0x7   :  { %203 = shalt.err (!%p200_p2)
}
   0x8   :  { %s204_s18 = scalar_lea.vmem %s18_s10, 1024  ;;  %p209_p4 = scmp.lt.s32.totalorder %s18_s10, %s18_s10 }
   0x9   :  { %p205_p3 = scmp.ne.s32.totalorder %s18_s10, %s204_s18  ;;  %p210_p5 = scmp.lt.s32.totalorder %s204_s18, %s204_s18 }
   0xb   :  { %p211_p6 = por %p210_p5, %p209_p4 }
   0xd   :  { %p212_p7 = pnand %p211_p6, %p205_p3 }
   0xf   :  { %215 = shalt.err (!%p212_p7)
}
  0x10   :  { %s243_s19 = smov 512   ;;  %s244_s20 = smov 32  }
  0x11   :  { %23 = dma.hbm_to_vmem [thread:$0]  %s401_s1, 1024, %s18_s10, [#allocation4], %s243_s19, %s243_s19, %s244_s20  }
  0x12   :  { %238 = dma.done.wait [#allocation4], 1024  }
  0x13   :  { %239 = vsyncadd [#allocation4], 4294966272  ;;  %v279_v0 = vstv %s400_s0  ;;  %v281_v1 = vld [vmem:[#allocation3] sm:$0xff]  ;;  %v283_v2 = vld [vmem:[#allocation3 + $0x8] sm:$0xff]  ;;  %s245_s0 = smov [#allocation6]  }
  0x14   :  { %v285_v3 = vld [vmem:[#allocation3 + $0x10] sm:$0xff]  ;;  %vm37_vm0 = vcmp.lt.f32.partialorder %v281_v1, %v279_v0  ;;  %vm38_vm1 = vcmp.lt.f32.partialorder %v283_v2, %v279_v0  ;;  %v293_v4 = vld [vmem:[#allocation3 + $0x18] sm:$0xff]  ;;  %v311_v10 = vld [vmem:[#allocation3 + $0x20] sm:$0xff]  ;;  %s146_s1 = sshll.u32 %s245_s0, 4  ;;  %s147_s1 = int_to_ptr.vmem [resolvable:$true] %s146_s1 }
  0x15   :  { %vm39_vm2 = vcmp.lt.f32.partialorder %v285_v3, %v279_v0  ;;  %v45_v5 = vsel %vm37_vm0, %v281_v1, 0.0  ;;  %v46_v6 = vsel %vm38_vm1, %v283_v2, 0.0  ;;  %vm40_vm3 = vcmp.lt.f32.partialorder %v293_v4, %v279_v0  ;;  %v317_v16 = vld [vmem:[#allocation3 + $0x28] sm:$0xff]  ;;  %v326_v21 = vld [vmem:[#allocation3 + $0x30] sm:$0xff]  ;;  %v336_v26 = vld [vmem:[#allocation3 + $0x38] sm:$0xff]  ;;  %s216_s25 = scalar_lea.vmem %s147_s1, 1024  ;;  %p221_p9 = scmp.lt.s32.totalorder %s147_s1, %s147_s1 }
  0x16   :  { %v47_v7 = vsel %vm39_vm2, %v285_v3, 0.0  ;;  %v69_v8 = vsub.f32 %v279_v0, %v45_v5  ;;  %v77_v9 = vadd.f32 %v45_v5, %v279_v0  ;;  %v70_v11 = vsub.f32 %v279_v0, %v46_v6  ;;  %p217_p8 = scmp.ne.s32.totalorder %s147_s1, %s216_s25  ;;  %p222_p10 = scmp.lt.s32.totalorder %s216_s25, %s216_s25 }
  0x17   :  { %v78_v12 = vadd.f32 %v46_v6, %v279_v0  ;;  %v71_v13 = vsub.f32 %v279_v0, %v47_v7  ;;  %v79_v15 = vadd.f32 %v47_v7, %v279_v0  ;;  %v48_v18 = vsel %vm40_vm3, %v293_v4, 0.0 }
  0x18   :  { %v85_v14 = vmul.f32 %v77_v9, %v69_v8  ;;  %vm41_vm4 = vcmp.lt.f32.partialorder %v311_v10, %v279_v0  ;;  %v72_v20 = vsub.f32 %v279_v0, %v48_v18  ;;  %v80_v22 = vadd.f32 %v48_v18, %v279_v0  ;;  %p223_p11 = por %p222_p10, %p221_p9 }
  0x19   :  { %v86_v17 = vmul.f32 %v78_v12, %v70_v11  ;;  %v87_v19 = vmul.f32 %v79_v15, %v71_v13  ;;  %v49_v23 = vsel %vm41_vm4, %v311_v10, 0.0  ;;  %vm42_vm5 = vcmp.lt.f32.partialorder %v317_v16, %v279_v0 }
  0x1a   :  { %162 = vrcp.f32 %v85_v14  ;;  %v53_v24 = vmul.f32 %v45_v5, %v45_v5  ;;  %v73_v25 = vsub.f32 %v279_v0, %v49_v23  ;;  %v88_v27 = vmul.f32 %v80_v22, %v72_v20  ;;  %p224_p12 = pnand %p223_p11, %p217_p8 }
  0x1b   :  { %164 = vrcp.f32 %v86_v17  ;;  %v81_v28 = vadd.f32 %v49_v23, %v279_v0  ;;  %v50_v29 = vsel %vm42_vm5, %v317_v16, 0.0  ;;  %vm43_vm6 = vcmp.lt.f32.partialorder %v326_v21, %v279_v0 }
  0x1c   :  { %166 = vrcp.f32 %v87_v19  ;;  %v54_v30 = vmul.f32 %v46_v6, %v46_v6  ;;  %v55_v31 = vmul.f32 %v47_v7, %v47_v7  ;;  %v74_v32 = vsub.f32 %v279_v0, %v50_v29 }
  0x1d   :  { %v82_v33 = vadd.f32 %v50_v29, %v279_v0  ;;  %168 = vrcp.f32 %v88_v27  ;;  %v89_v34 = vmul.f32 %v81_v28, %v73_v25  ;;  %v51_v35 = vsel %vm43_vm6, %v326_v21, 0.0 }
  0x1e   :  { %vm44_vm7 = vcmp.lt.f32.partialorder %v336_v26, %v279_v0  ;;  %v75_v37 = vsub.f32 %v279_v0, %v51_v35  ;;  %v61_v38 = vsub.f32 0.0, %v53_v24  ;;  %v83_v39 = vadd.f32 %v51_v35, %v279_v0 }
  0x1f   :  { %v90_v36 = vmul.f32 %v82_v33, %v74_v32  ;;  %170 = vrcp.f32 %v89_v34  ;;  %v52_v40 = vsel %vm44_vm7, %v336_v26, 0.0  ;;  %v62_v41 = vsub.f32 0.0, %v54_v30 }
  0x20   :  { %v56_v42 = vmul.f32 %v48_v18, %v48_v18  ;;  %v76_v43 = vsub.f32 %v279_v0, %v52_v40  ;;  %v63_v44 = vsub.f32 0.0, %v55_v31  ;;  %v91_v45 = vmul.f32 %v83_v39, %v75_v37 }
  0x21   :  { %172 = vrcp.f32 %v90_v36  ;;  %v84_v46 = vadd.f32 %v52_v40, %v279_v0  ;;  %v57_v48 = vmul.f32 %v49_v23, %v49_v23  ;;  %v58_v51 = vmul.f32 %v50_v29, %v50_v29 }
  0x22   :  { %174 = vrcp.f32 %v91_v45  ;;  %v64_v55 = vsub.f32 0.0, %v56_v42  ;;  %v59_v60 = vmul.f32 %v51_v35, %v51_v35  ;;  %v60_v6 = vmul.f32 %v52_v40, %v52_v40 }
  0x23   :  { %v92_v52 = vmul.f32 %v84_v46, %v76_v43  ;;  %v65_v59 = vsub.f32 0.0, %v57_v48  ;;  %v66_v63 = vsub.f32 0.0, %v58_v51 }
  0x24   :  { %v163_v47 = vpop.eup %162  ;;  %v67_v12 = vsub.f32 0.0, %v59_v60  ;;  %v68_v15 = vsub.f32 0.0, %v60_v6 }
  0x25   :  { %v165_v49 = vpop.eup %164  ;;  %v94_v50 = vmul.f32 %v163_v47, %v61_v38  ;;  %176 = vrcp.f32 %v92_v52 }
  0x26   :  { %v167_v53 = vpop.eup %166  ;;  %v96_v54 = vmul.f32 %v165_v49, %v62_v41 }
  0x27   :  { %v109_v56 = vmul.f32 1.442695, %v94_v50  ;;  %v98_v57 = vmul.f32 %v167_v53, %v63_v44  ;;  %v169_v61 = vpop.eup %168 }
  0x28   :  { %v111_v58 = vmul.f32 1.442695, %v96_v54  ;;  %v100_v5 = vmul.f32 %v169_v61, %v64_v55 }
  0x29   :  { %178 = vpow2.f32 %v109_v56  ;;  %v113_v62 = vmul.f32 1.442695, %v98_v57  ;;  %v171_v7 = vpop.eup %170 }
  0x2a   :  { %180 = vpow2.f32 %v111_v58  ;;  %v115_v9 = vmul.f32 1.442695, %v100_v5  ;;  %v102_v11 = vmul.f32 %v171_v7, %v65_v59 }
  0x2b   :  { %182 = vpow2.f32 %v113_v62  ;;  %v173_v8 = vpop.eup %172 }
  0x2c   :  { %v104_v13 = vmul.f32 %v173_v8, %v66_v63  ;;  %184 = vpow2.f32 %v115_v9  ;;  %v117_v14 = vmul.f32 1.442695, %v102_v11  ;;  %v175_v17 = vpop.eup %174 }
  0x2d   :  { %v106_v19 = vmul.f32 %v175_v17, %v67_v12 }
  0x2e   :  { %v119_v18 = vmul.f32 1.442695, %v104_v13  ;;  %186 = vpow2.f32 %v117_v14 }
  0x2f   :  { %v177_v20 = vpop.eup %176  ;;  %v121_v22 = vmul.f32 1.442695, %v106_v19 }
  0x30   :  { %188 = vpow2.f32 %v119_v18  ;;  %v108_v23 = vmul.f32 %v177_v20, %v68_v15 }
  0x31   :  { %190 = vpow2.f32 %v121_v22 }
  0x32   :  { %v123_v28 = vmul.f32 1.442695, %v108_v23 }
  0x33   :  { %v179_v24 = vpop.eup %178 }
  0x34   :  { %v181_v25 = vpop.eup %180  ;;  %v125_v27 = vsel %vm37_vm0, %v179_v24, 0.0  ;;  %192 = vpow2.f32 %v123_v28 }
  0x35   :  { %v183_v29 = vpop.eup %182  ;;  %133 = vst [vmem:[#allocation6] sm:$0xff] %v125_v27  ;;  %v126_v30 = vsel %vm38_vm1, %v181_v25, 0.0 }
  0x36   :  { %134 = vst [vmem:[#allocation6 + $0x8] sm:$0xff] %v126_v30  ;;  %v127_v31 = vsel %vm39_vm2, %v183_v29, 0.0  ;;  %v185_v32 = vpop.eup %184 }
  0x37   :  { %135 = vst [vmem:[#allocation6 + $0x10] sm:$0xff] %v127_v31  ;;  %v128_v1 = vsel %vm40_vm3, %v185_v32, 0.0 }
  0x38   :  { %v187_v33 = vpop.eup %186  ;;  %136 = vst [vmem:[#allocation6 + $0x18] sm:$0xff] %v128_v1 }
  0x39   :  { %v129_v2 = vsel %vm41_vm4, %v187_v33, 0.0 }
  0x3a   :  { %v189_v34 = vpop.eup %188  ;;  %137 = vst [vmem:[#allocation6 + $0x20] sm:$0xff] %v129_v2 }
  0x3b   :  { %v130_v3 = vsel %vm42_vm5, %v189_v34, 0.0  ;;  %v191_v35 = vpop.eup %190 }
  0x3c   :  { %138 = vst [vmem:[#allocation6 + $0x28] sm:$0xff] %v130_v3  ;;  %v131_v4 = vsel %vm43_vm6, %v191_v35, 0.0 }
  0x3d   :  { %139 = vst [vmem:[#allocation6 + $0x30] sm:$0xff] %v131_v4 }
  0x3e   :  { %v193_v36 = vpop.eup %192 }
  0x3f   :  { %v132_v10 = vsel %vm44_vm7, %v193_v36, 0.0 }
  0x40   :  { %140 = vst [vmem:[#allocation6 + $0x38] sm:$0xff] %v132_v10 }
  0x41   :  { %227 = shalt.err (!%p224_p12)
}
  0x42   :  { %s228_s28 = scalar_lea.hbm %s402_s2, 1024 }
  0x43   :  { %p229_p13 = scmp.ne.s32.totalorder %s402_s2, %s228_s28  ;;  %p232_p0 = scmp.lt.u32.totalorder %s228_s28, %s402_s2 }
  0x45   :  { %p234_p1 = pnand %p232_p0, %p229_p13 }
  0x47   :  { %237 = shalt.err (!%p234_p1)
}
  0x48   :  { %152 = dma.vmem_to_hbm [thread:$0]  %s147_s1, 1024, %s402_s2, [#allocation5], %s243_s19, %s243_s19, %s244_s20  }
  0x49   :  { %240 = dma.done.wait [#allocation5], 1024  }
  0x4a   :  { %241 = vsyncadd [#allocation5], 4294966272 }
  0x4b   :  { %156 = vsyncpa [#allocation4], 1 }
  0x4c   :  { %157 = vsyncpa [#allocation5], 1 }

</bundles_post_ra>
